<compile_context>
chip_gen: v7x
topology: tpu7x:2x2x1
jax: 0.10.0
libtpu: 0.0.40
codegen_flags: <defaults>
</compile_context>

<pallas_src>
import jax
import jax.numpy as jnp
from jax import lax
from jax.experimental import pallas as pl
from jax.experimental.pallas import tpu as pltpu

# ---- small, module-consistent shapes ----
B = 2          # batch
L = 16         # sequence length
V = 20         # vocab size
E = 32         # embedding dim
C = 8          # n_channels
K = 3          # filter_size
T = L - K + 1  # conv output length (14)

LANES = 128    # pad folded-weight lane dim (K*C=24 -> 128): dense vregs
V_PAD = 128    # pad vocab contraction dim (V=20 -> 128): dense MXU tile


def simple_convnet_kernel(tok_ref, folded_ref, params_ref, out_ref):
    # tok_ref    : VMEM (B*L, 1)        int32 token ids
    # folded_ref : VMEM (V_PAD, LANES)  f32; rows [0,V), lanes [0,K*C) hold
    #              folded[v, k*C + c] = sum_e table[v, e] * W_conv[c, 0, k, e];
    #              everything else is zero padding.
    # params_ref : VMEM (3, C)          f32: row0 b_conv, row1 w_fc, row2 b_fc
    # out_ref    : VMEM (B, 1)          f32 sigmoid output

    # 1) One-hot "gather" fused with the (3, E)-wide conv: ONE MXU matmul.
    #    onehot[r, v] = (token[r] == v);   prod[r, k*C + c] = (table[tok[r]] @ W_k)[c]
    tok = tok_ref[...]                                               # (B*L, 1)
    vocab_ids = lax.broadcasted_iota(jnp.int32, (B * L, V_PAD), 1)
    onehot = (vocab_ids == tok).astype(jnp.float32)                  # (B*L, V_PAD)
    prod = jnp.dot(onehot, folded_ref[...],
                   preferred_element_type=jnp.float32)               # (B*L, LANES)

    # 2) Temporal K-tap sum via XLU sublane rolls:
    #    conv[b*L + t, c] = sum_k prod[b*L + t + k, k*C + c]   (valid for t < T)
    conv = prod[:, 0:C]
    for k in range(1, K):
        # shift = B*L - k  =>  rolled[i] = prod[(i + k) % (B*L)]
        rolled = pltpu.roll(prod, shift=B * L - k, axis=0)
        conv = conv + rolled[:, k * C:(k + 1) * C]
    conv = jnp.maximum(conv + params_ref[0:1, :], 0.0)               # bias + ReLU

    # 3) max_pool1d over the T valid time steps of each batch row.  Rows with
    #    t >= T (and roll wrap-around rows) are garbage and are masked with
    #    -FLT_MAX, which is a safe max identity regardless of the activation.
    row_ids = lax.broadcasted_iota(jnp.int32, (B * L, C), 0)
    neg = jnp.finfo(jnp.float32).min
    pooled_rows = []
    for b in range(B):
        in_b = (row_ids >= b * L) & (row_ids < b * L + T)
        pooled_rows.append(
            jnp.max(jnp.where(in_b, conv, neg), axis=0, keepdims=True))
    pooled = jnp.concatenate(pooled_rows, axis=0)                    # (B, C)

    # dropout_prob = 0.0 -> identity (eval semantics); nothing to do.

    # 4) Linear(C, 1) on the VPU/XLU (broadcast-mul + lane reduce) + sigmoid.
    w_fc = params_ref[1:2, :]                                        # (1, C)
    b_fc = params_ref[2:3, 0:1]                                      # (1, 1)
    logit = jnp.sum(pooled * w_fc, axis=1, keepdims=True) + b_fc     # (B, 1)
    out_ref[...] = 1.0 / (1.0 + jnp.exp(-logit))


def simple_convnet_forward(x_tokens, emb_table, w_conv, b_conv, w_fc, b_fc):
    """x_tokens: (B, L) int32. Returns sigmoid probabilities of shape (B,)."""
    tokens = x_tokens.reshape(B * L, 1).astype(jnp.int32)

    # One-time fold of the FROZEN embedding table with the conv weights:
    # folded[v, k*C + c] = sum_e table[v, e] * w_conv[c, 0, k, e]
    wk = jnp.transpose(w_conv[:, 0, :, :], (1, 2, 0))                # (K, E, C)
    folded = jnp.einsum(
        "ve,kec->vkc",
        emb_table.astype(jnp.float32), wk.astype(jnp.float32),
    ).reshape(V, K * C)
    folded_pad = jnp.zeros((V_PAD, LANES), jnp.float32)
    folded_pad = folded_pad.at[:V, :K * C].set(folded)

    # Remaining small params packed into one channels-last operand.
    params = jnp.concatenate(
        [
            b_conv.reshape(1, C),                          # row 0
            w_fc.reshape(1, C),                            # row 1
            jnp.full((1, C), b_fc[0], dtype=jnp.float32),  # row 2
        ],
        axis=0,
    ).astype(jnp.float32)

    out = pl.pallas_call(
        simple_convnet_kernel,
        out_shape=jax.ShapeDtypeStruct((B, 1), jnp.float32),
        in_specs=[
            pl.BlockSpec(memory_space=pltpu.MemorySpace.VMEM),   # tokens
            pl.BlockSpec(memory_space=pltpu.MemorySpace.VMEM),   # folded table
            pl.BlockSpec(memory_space=pltpu.MemorySpace.VMEM),   # packed params
        ],
        out_specs=pl.BlockSpec(memory_space=pltpu.MemorySpace.VMEM),
    )(tokens, folded_pad, params)
    return out[:, 0]


def reference_forward(x_tokens, emb_table, w_conv, b_conv, w_fc, b_fc):
    """Plain-JAX reference reproducing the PyTorch forward exactly."""
    emb = jnp.take(emb_table, x_tokens, axis=0)                       # (B, L, E)
    wk = jnp.transpose(w_conv[:, 0, :, :], (1, 2, 0))                 # (K, E, C)
    conv = jnp.zeros((B, T, C), jnp.float32)
    for k in range(K):
        conv = conv + jnp.einsum("ble,ec->blc", emb[:, k:k + T, :], wk[k])
    conv = conv + b_conv[None, None, :]
    conv = jnp.maximum(conv, 0.0)
    pooled = jnp.max(conv, axis=1)                                    # (B, C)
    logit = pooled @ w_fc.T + b_fc[None, :]                           # (B, 1)
    return (1.0 / (1.0 + jnp.exp(-logit)))[:, 0]                      # (B,)


if __name__ == "__main__":
    key = jax.random.PRNGKey(0)
    k_tok, k_emb, k_wc, k_bc, k_wf, k_bf = jax.random.split(key, 6)

    x_tokens = jax.random.randint(k_tok, (B, L), 0, V, dtype=jnp.int32)
    emb_table = jax.random.normal(k_emb, (V, E), dtype=jnp.float32)

    # Deterministic synthetic parameters in torch layouts.
    w_conv = 0.1 * jax.random.normal(k_wc, (C, 1, K, E), dtype=jnp.float32)
    b_conv = 0.1 * jax.random.normal(k_bc, (C,), dtype=jnp.float32)
    w_fc = 0.1 * jax.random.normal(k_wf, (1, C), dtype=jnp.float32)   # Linear(C, 1)
    b_fc = 0.1 * jax.random.normal(k_bf, (1,), dtype=jnp.float32)

    probs = simple_convnet_forward(x_tokens, emb_table, w_conv, b_conv, w_fc, b_fc)
    probs = jax.block_until_ready(probs)

    ref = reference_forward(x_tokens, emb_table, w_conv, b_conv, w_fc, b_fc)
    assert probs.shape == (B,)
    assert jnp.allclose(probs, ref, atol=1e-3, rtol=1e-3), (probs, ref)

    print("KERNEL_OK")
</pallas_src>

<mosaic_0001>
module attributes {stable_mosaic.version = 11 : i64} {
  func.func @simple_convnet_kernel(%arg0: memref<32x1xi32, #tpu.memory_space<vmem>>, %arg1: memref<128x128xf32, #tpu.memory_space<vmem>>, %arg2: memref<3x8xf32, #tpu.memory_space<vmem>>, %arg3: memref<2x1xf32, #tpu.memory_space<vmem>>) attributes {dimension_semantics = [], scalar_prefetch = 0 : i64, scratch_operands = 0 : i64, tpu.core_type = #tpu.core_type<tc>} {
    %c0 = arith.constant 0 : index
    %c0_0 = arith.constant 0 : index
    %0 = vector.load %arg0[%c0, %c0_0] : memref<32x1xi32, #tpu.memory_space<vmem>>, vector<32x1xi32>
    %1 = tpu.iota {dimensions = array<i32: 1>} : vector<32x128xi32>
    %2 = vector.broadcast %0 : vector<32x1xi32> to vector<32x128xi32>
    %3 = arith.cmpi eq, %1, %2 : vector<32x128xi32>
    %4 = arith.extui %3 : vector<32x128xi1> to vector<32x128xi32>
    %5 = arith.sitofp %4 : vector<32x128xi32> to vector<32x128xf32>
    %c0_1 = arith.constant 0 : index
    %c0_2 = arith.constant 0 : index
    %6 = vector.load %arg1[%c0_1, %c0_2] : memref<128x128xf32, #tpu.memory_space<vmem>>, vector<128x128xf32>
    %cst = arith.constant dense<0.000000e+00> : vector<32x128xf32>
    %7 = tpu.matmul %5, %6, %cst {dimension_numbers = #tpu.dot_dimension_numbers<[1], [0], [0], [1], [0, 0, 1, 1], [], []>} : vector<32x128xf32>, vector<128x128xf32>, vector<32x128xf32> -> vector<32x128xf32>
    %8 = vector.extract_strided_slice %7 {offsets = [0, 0], sizes = [32, 8], strides = [1, 1]} : vector<32x128xf32> to vector<32x8xf32>
    %c31_i32 = arith.constant 31 : i32
    %9 = tpu.dynamic_rotate %7 by %c31_i32 dim 0 : vector<32x128xf32>, i32 -> vector<32x128xf32>
    %10 = vector.extract_strided_slice %9 {offsets = [0, 8], sizes = [32, 8], strides = [1, 1]} : vector<32x128xf32> to vector<32x8xf32>
    %11 = arith.addf %8, %10 : vector<32x8xf32>
    %c30_i32 = arith.constant 30 : i32
    %12 = tpu.dynamic_rotate %7 by %c30_i32 dim 0 : vector<32x128xf32>, i32 -> vector<32x128xf32>
    %13 = vector.extract_strided_slice %12 {offsets = [0, 16], sizes = [32, 8], strides = [1, 1]} : vector<32x128xf32> to vector<32x8xf32>
    %14 = arith.addf %11, %13 : vector<32x8xf32>
    %c0_3 = arith.constant 0 : index
    %c0_4 = arith.constant 0 : index
    %15 = vector.load %arg2[%c0_3, %c0_4] : memref<3x8xf32, #tpu.memory_space<vmem>>, vector<1x8xf32>
    %16 = vector.broadcast %15 : vector<1x8xf32> to vector<32x8xf32>
    %17 = arith.addf %14, %16 : vector<32x8xf32>
    %cst_5 = arith.constant 0.000000e+00 : f32
    %18 = vector.broadcast %cst_5 : f32 to vector<32x8xf32>
    %19 = arith.maximumf %17, %18 : vector<32x8xf32>
    %20 = tpu.iota {dimensions = array<i32: 0>} : vector<32x8xi32>
    %c0_i32 = arith.constant 0 : i32
    %21 = vector.broadcast %c0_i32 : i32 to vector<32x8xi32>
    %22 = arith.cmpi sge, %20, %21 : vector<32x8xi32>
    %c14_i32 = arith.constant 14 : i32
    %23 = vector.broadcast %c14_i32 : i32 to vector<32x8xi32>
    %24 = arith.cmpi slt, %20, %23 : vector<32x8xi32>
    %25 = arith.andi %22, %24 : vector<32x8xi1>
    %cst_6 = arith.constant -3.40282347E+38 : f32
    %26 = vector.broadcast %cst_6 : f32 to vector<32x8xf32>
    %27 = arith.select %25, %19, %26 : vector<32x8xi1>, vector<32x8xf32>
    %cst_7 = arith.constant dense<0xFF800000> : vector<8xf32>
    %28 = vector.multi_reduction <maximumf>, %27, %cst_7 [0] : vector<32x8xf32> to vector<8xf32>
    %29 = vector.shape_cast %28 : vector<8xf32> to vector<1x8xf32>
    %c16_i32 = arith.constant 16 : i32
    %30 = vector.broadcast %c16_i32 : i32 to vector<32x8xi32>
    %31 = arith.cmpi sge, %20, %30 : vector<32x8xi32>
    %c30_i32_8 = arith.constant 30 : i32
    %32 = vector.broadcast %c30_i32_8 : i32 to vector<32x8xi32>
    %33 = arith.cmpi slt, %20, %32 : vector<32x8xi32>
    %34 = arith.andi %31, %33 : vector<32x8xi1>
    %cst_9 = arith.constant -3.40282347E+38 : f32
    %35 = vector.broadcast %cst_9 : f32 to vector<32x8xf32>
    %36 = arith.select %34, %19, %35 : vector<32x8xi1>, vector<32x8xf32>
    %cst_10 = arith.constant dense<0xFF800000> : vector<8xf32>
    %37 = vector.multi_reduction <maximumf>, %36, %cst_10 [0] : vector<32x8xf32> to vector<8xf32>
    %38 = vector.shape_cast %37 : vector<8xf32> to vector<1x8xf32>
    %39 = tpu.concatenate %29, %38 in 0 : vector<1x8xf32>, vector<1x8xf32> -> vector<2x8xf32>
    %c1 = arith.constant 1 : index
    %c0_11 = arith.constant 0 : index
    %40 = vector.load %arg2[%c1, %c0_11] : memref<3x8xf32, #tpu.memory_space<vmem>>, vector<1x8xf32>
    %c2 = arith.constant 2 : index
    %c0_12 = arith.constant 0 : index
    %41 = vector.load %arg2[%c2, %c0_12] : memref<3x8xf32, #tpu.memory_space<vmem>>, vector<1x1xf32>
    %42 = vector.broadcast %40 : vector<1x8xf32> to vector<2x8xf32>
    %43 = arith.mulf %39, %42 : vector<2x8xf32>
    %cst_13 = arith.constant dense<0.000000e+00> : vector<2xf32>
    %44 = vector.multi_reduction <add>, %43, %cst_13 [1] : vector<2x8xf32> to vector<2xf32>
    %45 = vector.shape_cast %44 : vector<2xf32> to vector<2x1xf32>
    %46 = vector.broadcast %41 : vector<1x1xf32> to vector<2x1xf32>
    %47 = arith.addf %45, %46 : vector<2x1xf32>
    %cst_14 = arith.constant 0.000000e+00 : f32
    %48 = vector.broadcast %cst_14 : f32 to vector<2x1xf32>
    %49 = arith.subf %48, %47 : vector<2x1xf32>
    %50 = math.exp %49 : vector<2x1xf32>
    %cst_15 = arith.constant 1.000000e+00 : f32
    %51 = vector.broadcast %cst_15 : f32 to vector<2x1xf32>
    %52 = arith.addf %51, %50 : vector<2x1xf32>
    %cst_16 = arith.constant 1.000000e+00 : f32
    %53 = vector.broadcast %cst_16 : f32 to vector<2x1xf32>
    %54 = arith.divf %53, %52 : vector<2x1xf32>
    %c0_17 = arith.constant 0 : index
    %c0_18 = arith.constant 0 : index
    %55 = vector.load %arg3[%c0_17, %c0_18] : memref<2x1xf32, #tpu.memory_space<vmem>>, vector<2x1xf32>
    tpu.vector_store %arg3[%c0_17, %c0_18], %54 {strides = array<i32>} : memref<2x1xf32, #tpu.memory_space<vmem>>, vector<2x1xf32>,
    return
  }
}

</mosaic_0001>

<bundles_post_ra>
// kernel: tpu_custom_call.1
= control target key start
LH: loop header
LB: loop body
LE: loop exit
PB: predicated region body
PF: predicated region fallthrough
CT: control target
= control target key end

     0   :  { %8 = vsyncpa [#allocation3], 0  ;;  %s480_s12 = smov [#allocation2]   ;;  %s552_s0 = inlined_call_operand.vmem [shape: s32[32,1], index: 0, kind: input, shape index: {}]   ;;  %s553_s1 = inlined_call_operand.hbm [shape: f32[128,128], index: 1, kind: input, shape index: {}]   ;;  %s554_s2 = inlined_call_operand.vmem [shape: f32[3,8], index: 2, kind: input, shape index: {}]   ;;  %s555_s3 = inlined_call_operand.vmem [shape: f32[2,1], index: 3, kind: output, shape index: {}]  }
   0x1   :  { %s16_s13 = sshll.u32 %s480_s12, 4  ;;  %s456_s16 = scalar_lea.hbm %s553_s1, 2048  ;;  %s17_s13 = int_to_ptr.vmem [resolvable:$true] %s16_s13 }
   0x2   :  { %p457_p0 = scmp.ne.s32.totalorder %s553_s1, %s456_s16  ;;  %p460_p1 = scmp.lt.u32.totalorder %s456_s16, %s553_s1 }
   0x4   :  { %p462_p2 = pnand %p460_p1, %p457_p0 }
   0x6   :  { %465 = shalt.err (!%p462_p2)
}
   0x7   :  { %s466_s21 = scalar_lea.vmem %s17_s13, 2048  ;;  %p471_p4 = scmp.lt.s32.totalorder %s17_s13, %s17_s13 }
   0x8   :  { %p467_p3 = scmp.ne.s32.totalorder %s17_s13, %s466_s21  ;;  %p472_p5 = scmp.lt.s32.totalorder %s466_s21, %s466_s21 }
   0xa   :  { %p473_p6 = por %p472_p5, %p471_p4 }
   0xc   :  { %p474_p7 = pnand %p473_p6, %p467_p3 }
   0xe   :  { %477 = shalt.err (!%p474_p7)
}
   0xf   :  { %s481_s22 = smov 128   ;;  %s482_s23 = smov 8  }
  0x10   :  { %22 = dma.hbm_to_vmem [thread:$0]  %s553_s1, 2048, %s17_s13, [#allocation3], %s481_s22, %s481_s22, %s482_s23  }
  0x11   :  { %478 = dma.done.wait [#allocation3], 2048  }
  0x12   :  { %479 = vsyncadd [#allocation3], 4294965248  ;;  %v483_v0 = vmov 0   ;;  %v29_v1 = vld [vmem:[%s552_s0 + $0x8] sm:$0xff]  ;;  %v28_v2 = vld [vmem:[%s552_s0] sm:$0xff]  ;;  %v32_v29 = vlaneseq  ;;  %v484_v33 = vmov 1.0  }
  0x13   :  { %451 = vset.pattern.permute.xlu1 %v483_v0  ;;  %450 = vset.pattern.permute.xlu0 %v483_v0  ;;  %v31_v3 = vld [vmem:[%s552_s0 + $0x18] sm:$0xff]  ;;  %v58_v4 = vld [vmem:[#allocation2] sm:$0xff]  ;;  %v59_v5 = vld [vmem:[#allocation2 + $0x8] sm:$0xff]  ;;  %s486_s6 = smov 112   ;;  %vm251_vm8 = vcmask 64512   ;;  %vm294_vm9 = vcmask 1040384  }
  0x14   :  { %38 = vperm.xlu1 %451, %v29_v1   ;;  %35 = vperm.xlu0 %450, %v28_v2   ;;  %v30_v6 = vld [vmem:[%s552_s0 + $0x10] sm:$0xff]  ;;  %v394_v7 = vpack.c.bf16 %v59_v5, %v58_v4  ;;  %v61_v9 = vld [vmem:[#allocation2 + $0x18] sm:$0xff]  ;;  %v62_v11 = vld [vmem:[#allocation2 + $0x20] sm:$0xff]  ;;  %v33_v30 = vand.u32 127, %v32_v29  ;;  %v164_v36 = vshrl.u32 %v32_v29, 7  ;;  %s485_s0 = smov 120  }
  0x15   :  { %v60_v8 = vld [vmem:[#allocation2 + $0x10] sm:$0xff]  ;;  %v63_v12 = vld [vmem:[#allocation2 + $0x28] sm:$0xff]  ;;  %v65_v15 = vld [vmem:[#allocation2 + $0x38] sm:$0xff]  ;;  %vm303_vm10 = vcmask 58368   ;;  %vm318_vm11 = vcmask 1024  }
  0x16   :  { %v398_v10 = vpack.c.bf16 %v61_v9, %v60_v8  ;;  %395 = vmatprep.subr.bf16.mxu0 %v394_v7  ;;  %426 = vmatprep.subr.bf16.mxu1 %v394_v7  ;;  %v402_v13 = vpack.c.bf16 %v63_v12, %v62_v11  ;;  %v64_v14 = vld [vmem:[#allocation2 + $0x30] sm:$0xff]  ;;  %v66_v17 = vld [vmem:[#allocation2 + $0x40] sm:$0xff]  ;;  %v67_v18 = vld [vmem:[#allocation2 + $0x48] sm:$0xff]  ;;  %vm165_vm4 = vcmp.lt.s32.totalorder %v164_v36, 7  ;;  %vm194_vm5 = vcmp.lt.s32.totalorder %v164_v36, 6 }
  0x17   :  { %397 = vmatpush3.bf16.msra.mxu0 %v394_v7  ;;  %434 = vmatpush3.bf16.msra.mxu1 %v394_v7  ;;  %v406_v16 = vpack.c.bf16 %v65_v15, %v64_v14  ;;  %v410_v19 = vpack.c.bf16 %v67_v18, %v66_v17  ;;  %v68_v20 = vld [vmem:[#allocation2 + $0x50] sm:$0xff]  ;;  %v69_v21 = vld [vmem:[#allocation2 + $0x58] sm:$0xff]  ;;  %v70_v23 = vld [vmem:[#allocation2 + $0x60] sm:$0xff]  ;;  %v234_v1 = vadd.s32 24, %v164_v36  ;;  %v232_v4 = vadd.s32 8, %v164_v36 }
  0x18   :  { %44 = vperm.xlu1 %451, %v31_v3   ;;  %41 = vperm.xlu0 %450, %v30_v6   ;;  %v414_v22 = vpack.c.bf16 %v69_v21, %v68_v20  ;;  %v71_v24 = vld [vmem:[#allocation2 + $0x68] sm:$0xff]  ;;  %v72_v26 = vld [vmem:[#allocation2 + $0x70] sm:$0xff]  ;;  %v73_v27 = vld [vmem:[#allocation2 + $0x78] sm:$0xff] }
  0x19   :  { %399 = vmatprep.subr.bf16.mxu0 %v398_v10  ;;  %427 = vmatprep.subr.bf16.mxu1 %v398_v10  ;;  %v418_v25 = vpack.c.bf16 %v71_v24, %v70_v23  ;;  %v422_v28 = vpack.c.bf16 %v73_v27, %v72_v26  ;;  %v333_v63 = vld [vmem:[%s554_s2] ss:$0 sm:$0xff]  ;;  %vm272_vm6 = vcmp.lt.s32.totalorder %v234_v1, 30  ;;  %vm240_vm7 = vcmp.lt.s32.totalorder %v232_v4, 14 }
  0x1a   :  { %v487_v23 = vmov -inf  }
  0x1b   :  { %401 = vmatpush3.bf16.msra.mxu0 %v398_v10  ;;  %435 = vmatpush3.bf16.msra.mxu1 %v398_v10  ;;  %v254_v24 = vsel %vm251_vm8, -3.4028235e+38, %v487_v23 }
  0x1c   :  { %403 = vmatprep.subr.bf16.mxu0 %v402_v13  ;;  %428 = vmatprep.subr.bf16.mxu1 %v402_v13 }
  0x1f   :  { %405 = vmatpush3.bf16.msra.mxu0 %v402_v13  ;;  %436 = vmatpush3.bf16.msra.mxu1 %v402_v13 }
  0x20   :  { %407 = vmatprep.subr.bf16.mxu0 %v406_v16  ;;  %429 = vmatprep.subr.bf16.mxu1 %v406_v16 }
  0x23   :  { %409 = vmatpush3.bf16.msra.mxu0 %v406_v16  ;;  %437 = vmatpush3.bf16.msra.mxu1 %v406_v16 }
  0x24   :  { %411 = vmatprep.subr.bf16.mxu0 %v410_v19  ;;  %430 = vmatprep.subr.bf16.mxu1 %v410_v19 }
  0x27   :  { %413 = vmatpush3.bf16.msra.mxu0 %v410_v19  ;;  %438 = vmatpush3.bf16.msra.mxu1 %v410_v19 }
  0x28   :  { %415 = vmatprep.subr.bf16.mxu0 %v414_v22  ;;  %431 = vmatprep.subr.bf16.mxu1 %v414_v22 }
  0x2b   :  { %417 = vmatpush3.bf16.msra.mxu0 %v414_v22  ;;  %439 = vmatpush3.bf16.msra.mxu1 %v414_v22 }
  0x2c   :  { %419 = vmatprep.subr.bf16.mxu0 %v418_v25  ;;  %432 = vmatprep.subr.bf16.mxu1 %v418_v25 }
  0x2f   :  { %421 = vmatpush3.bf16.msra.mxu0 %v418_v25  ;;  %440 = vmatpush3.bf16.msra.mxu1 %v418_v25 }
  0x30   :  { %423 = vmatprep.subr.bf16.mxu0 %v422_v28  ;;  %433 = vmatprep.subr.bf16.mxu1 %v422_v28 }
  0x33   :  { %425 = vmatpush3.bf16.msra.mxu0 %v422_v28  ;;  %441 = vmatpush3.bf16.msra.mxu1 %v422_v28 }
  0x93   :  { %v39_v31 = vpop.permute.xlu1 %38  ;;  %v36_v32 = vpop.permute.xlu0 %35 }
  0x94   :  { %vm47_vm0 = vcmp.eq.s32.totalorder %v33_v30, %v39_v31  ;;  %vm46_vm1 = vcmp.eq.s32.totalorder %v33_v30, %v36_v32 }
  0x95   :  { %388 = vmatprep.mubr.msk.f32.mxu0 %vm46_vm1, %v484_v33 }
  0x96   :  { %389 = vmatmul.mubr.msk.f32.vlgmr.msra.gmra.mrb[0].mxu0 %vm47_vm0, %v484_v33 }
  0x97   :  { %v45_v34 = vpop.permute.xlu1 %44  ;;  %v42_v35 = vpop.permute.xlu0 %41 }
  0x98   :  { %vm49_vm2 = vcmp.eq.s32.totalorder %v33_v30, %v45_v34  ;;  %vm48_vm3 = vcmp.eq.s32.totalorder %v33_v30, %v42_v35 }
  0x99   :  { %391 = vmatprep.mubr.msk.f32.mxu1 %vm48_vm3, %v484_v33 }
  0x9a   :  { %392 = vmatmul.mubr.msk.f32.vlgmr.msra.gmra.mrb[0].mxu1 %vm49_vm2, %v484_v33 }
 0x169   :  { %v390_v37 = vpop.f32.mrb[0].mxu0 }
 0x16a   :  { %v160_v38 = vrot.slane %v390_v37, 1  ;;  %v191_v39 = vrot.slane %v390_v37, 2  ;;  %v140_v40 = vpop.f32.mrb[1].mxu0 }
 0x16b   :  { %v159_v41 = vrot.slane %v140_v40, 1  ;;  %v190_v42 = vrot.slane %v140_v40, 2 }
 0x16d   :  { %v393_v43 = vpop.f32.mrb[0].mxu1  ;;  %v168_v44 = vsel %vm165_vm4, %v159_v41, %v160_v38  ;;  %v197_v45 = vsel %vm194_vm5, %v190_v42, %v191_v39 }
 0x16e   :  { %v162_v46 = vrot.slane %v393_v43, 1  ;;  %v193_v47 = vrot.slane %v393_v43, 2  ;;  %v150_v48 = vpop.f32.mrb[1].mxu1 }
 0x16f   :  { %v161_v49 = vrot.slane %v150_v48, 1  ;;  %v192_v50 = vrot.slane %v150_v48, 2 }
 0x170   :  { %v169_v51 = vsel %vm165_vm4, %v162_v46, %v159_v41  ;;  %v198_v52 = vsel %vm194_vm5, %v193_v47, %v190_v42 }
 0x171   :  { %180 = vrot.lane.b32.xlu1 %v169_v51, %s485_s0  ;;  %v167_v53 = vsel %vm165_vm4, %v160_v38, %v161_v49  ;;  %v166_v54 = vsel %vm165_vm4, %v161_v49, %v162_v46  ;;  %v196_v55 = vsel %vm194_vm5, %v191_v39, %v192_v50  ;;  %v195_v56 = vsel %vm194_vm5, %v192_v50, %v193_v47 }
 0x172   :  { %176 = vrot.lane.b32.xlu0 %v167_v53, %s485_s0 }
 0x175   :  { %178 = vrot.lane.b32.xlu1 %v166_v54, %s485_s0 }
 0x176   :  { %174 = vrot.lane.b32.xlu0 %v168_v44, %s485_s0  ;;  %v334_v44 = vld [vmem:[%s554_s2 + $0x1] ss:$0 sm:$0xff] }
 0x179   :  { %209 = vrot.lane.b32.xlu1 %v198_v52, %s486_s6 }
 0x17a   :  { %205 = vrot.lane.b32.xlu0 %v196_v55, %s486_s6 }
 0x17d   :  { %207 = vrot.lane.b32.xlu1 %v195_v56, %s486_s6 }
 0x17e   :  { %203 = vrot.lane.b32.xlu0 %v197_v45, %s486_s6 }
 0x1e3   :  { %v181_v57 = vpop.permute.xlu1 %180 }
 0x1e4   :  { %v177_v58 = vpop.permute.xlu0 %176  ;;  %v189_v61 = vadd.f32 %v393_v43, %v181_v57 }
 0x1e5   :  { %v187_v62 = vadd.f32 %v390_v37, %v177_v58 }
 0x1e7   :  { %v179_v59 = vpop.permute.xlu1 %178 }
 0x1e8   :  { %v175_v60 = vpop.permute.xlu0 %174  ;;  %v188_v6 = vadd.f32 %v179_v59, %v150_v48  ;;  %v335_v48 = vld [vmem:[%s554_s2 + $0x2] ss:$0 sm:$0xff] }
 0x1e9   :  { %v186_v8 = vadd.f32 %v175_v60, %v140_v40 }
 0x1eb   :  { %v210_v0 = vpop.permute.xlu1 %209 }
 0x1ec   :  { %v218_v2 = vadd.f32 %v210_v0, %v189_v61  ;;  %v206_v3 = vpop.permute.xlu0 %205 }
 0x1ed   :  { %v216_v5 = vadd.f32 %v206_v3, %v187_v62 }
 0x1ee   :  { %v227_v7 = vadd.f32 %v333_v63, %v218_v2 }
 0x1ef   :  { %v225_v9 = vadd.f32 %v333_v63, %v216_v5  ;;  %v208_v10 = vpop.permute.xlu1 %207 }
 0x1f0   :  { %v231_v11 = vmax.f32 %v227_v7, 0.0  ;;  %v217_v12 = vadd.f32 %v208_v10, %v188_v6  ;;  %v204_v13 = vpop.permute.xlu0 %203 }
 0x1f1   :  { %v229_v14 = vmax.f32 %v225_v9, 0.0  ;;  %v215_v15 = vadd.f32 %v204_v13, %v186_v8 }
 0x1f2   :  { %v226_v16 = vadd.f32 %v333_v63, %v217_v12  ;;  %v280_v17 = vsel %vm272_vm6, %v231_v11, -3.4028235e+38 }
 0x1f3   :  { %v224_v18 = vadd.f32 %v333_v63, %v215_v15  ;;  %v248_v19 = vsel %vm240_vm7, %v229_v14, -3.4028235e+38  ;;  %v284_v22 = vsel %vm251_vm8, %v280_v17, -inf }
 0x1f4   :  { %v230_v20 = vmax.f32 %v226_v16, 0.0  ;;  %v253_v26 = vsel %vm251_vm8, %v248_v19, -inf }
 0x1f5   :  { %v228_v21 = vmax.f32 %v224_v18, 0.0 }
 0x1f6   :  { %v283_v25 = vsel %vm251_vm8, %v230_v20, -inf }
 0x1f7   :  { %v286_v27 = vmax.f32 %v283_v25, %v284_v22  ;;  %v252_v28 = vsel %vm251_vm8, %v228_v21, -inf }
 0x1f8   :  { %v256_v29 = vmax.f32 %v252_v28, %v253_v26 }
 0x1f9   :  { %v287_v30 = vmax.f32 %v254_v24, %v286_v27 }
 0x1fa   :  { %v258_v31 = vmax.f32 %v256_v29, %v254_v24 }
 0x1fb   :  { %v288_v32 = vrot.slane %v287_v30, 4 }
 0x1fc   :  { %v259_v33 = vrot.slane %v258_v31, 4 }
 0x1fd   :  { %v289_v34 = vmax.f32 %v287_v30, %v288_v32 }
 0x1fe   :  { %v260_v35 = vmax.f32 %v258_v31, %v259_v33 }
 0x1ff   :  { %v290_v36 = vrot.slane %v289_v34, 2 }
 0x200   :  { %v261_v37 = vrot.slane %v260_v35, 2 }
 0x201   :  { %v291_v38 = vmax.f32 %v289_v34, %v290_v36 }
 0x202   :  { %v262_v39 = vmax.f32 %v260_v35, %v261_v37 }
 0x203   :  { %v292_v40 = vrot.slane %v291_v38, 1 }
 0x204   :  { %v263_v41 = vrot.slane %v262_v39, 1 }
 0x205   :  { %v293_v42 = vmax.f32 %v291_v38, %v292_v40 }
 0x206   :  { %v264_v43 = vmax.f32 %v262_v39, %v263_v41 }
 0x208   :  { %v295_v45 = vsel %vm294_vm9, %v264_v43, %v293_v42 }
 0x209   :  { %v302_v46 = vmul.f32 %v334_v44, %v295_v45 }
 0x20b   :  { %v304_v47 = vsel %vm303_vm10, %v302_v46, 0.0 }
 0x20c   :  { %305 = vadd.xlane.f32.xlu0 %v304_v47 }
 0x299   :  { %v306_v49 = vpop.xlane.xlu0 %305 }
 0x29a   :  { %v311_v50 = vadd.f32 %v335_v48, %v306_v49 }
 0x29c   :  { %v312_v51 = vsub.f32 0.0, %v311_v50 }
 0x29e   :  { %v313_v52 = vmul.f32 1.442695, %v312_v51 }
 0x2a0   :  { %452 = vpow2.f32 %v313_v52 }
 0x2aa   :  { %v453_v53 = vpop.eup %452 }
 0x2ab   :  { %v315_v54 = vadd.f32 1.0, %v453_v53 }
 0x2ad   :  { %454 = vrcp.f32 %v315_v54 }
 0x2b7   :  { %v455_v55 = vpop.eup %454 }
 0x2b8   :  { %319 = vst.msk [vmem:[%s555_s3] sm:$0x3] %vm318_vm11, %v455_v55 }
 0x2b9   :  { %324 = vsyncpa [#allocation3], 1 }

</bundles_post_ra>
